<compile_context>
chip_gen: v7x
topology: tpu7x:2x2x1
jax: 0.10.0
libtpu: 0.0.40
codegen_flags: <defaults>
</compile_context>

<pallas_src>
import functools
from typing import Any, NamedTuple

import jax
import jax.numpy as jnp
from jax.experimental import pallas as pl
from jax.experimental.pallas import tpu as pltpu


def _round_up(x, m):
    return ((x + m - 1) // m) * m


def _vmem_limit_bytes():
    """Generation-gated scoped-VMEM limit (v7x: 64 MiB/TC; v5e/v6e: 128 MiB)."""
    cap = 64 * 1024 * 1024  # conservative default (v7x-sized)
    try:
        info = pltpu.get_tpu_info()
        cap_attr = getattr(info, "vmem_capacity_bytes", None)
        if cap_attr is not None:
            cap = int(cap_attr)
    except Exception:
        pass
    if cap >= 128 * 1024 * 1024:      # v5e / v6e
        return 96 * 1024 * 1024
    return 48 * 1024 * 1024           # v7x: stay well under the 64 MiB ceiling


def _pick_nk_tiles(K, N, compute_dtype, budget_bytes, tm_cap=512):
    """Pick (tn, tk): as large as the VMEM budget allows, preferring tile sizes
    that introduce zero extra N/K padding."""
    itemsize = jnp.dtype(compute_dtype).itemsize
    K128 = _round_up(K, 128)
    N128 = _round_up(N, 128)
    tn_cap = 512
    tk_cap = 2048 if itemsize <= 2 else 1024

    def pick(full, cap):
        if full <= cap:
            return full                       # one full panel, no extra pad
        for t in range(cap, 127, -128):        # largest 128-multiple divisor
            if full % t == 0:
                return t
        return cap

    tn = pick(N128, tn_cap)
    tk = pick(K128, tk_cap)

    def footprint(tn_, tk_):
        # Double-buffered x/w/ss/out tiles + f32 accumulator (worst case).
        buf = 2 * (tm_cap * tk_ + tk_ * tn_) * itemsize
        buf += 2 * 2 * tn_ * 4
        buf += 2 * tm_cap * tn_ * 4
        if tk_ < K128:
            buf += tm_cap * tn_ * 4
        return buf

    while footprint(tn, tk) > budget_bytes:
        if tk > 256:
            tk = max(256, (tk // 2 // 128) * 128)
        elif tn > 128:
            tn = max(128, (tn // 2 // 128) * 128)
        else:
            break
    return tn, tk


class FcBlockParams(NamedTuple):
    w_p: jax.Array          # (K_pad, N_pad), compute dtype (pre-padded/cast)
    ss: jax.Array           # (2, N_pad) f32: row 0 = scale, row 1 = shift
    K: int
    N: int
    tn: int
    tk: int
    compute_dtype: Any
    vmem_limit: int


def prepare_fc_block(w, b, gamma, beta, running_mean, running_var, eps=1e-5,
                     *, compute_dtype=jnp.bfloat16, tile_n=None, tile_k=None):
    """One-time (model-load-time) weight prep: fold Linear bias + BatchNorm
    into per-channel scale/shift, transpose, pad and cast the weight once so
    the per-forward path never re-touches the KxN weight in HBM."""
    planes, inplanes = w.shape
    inv_std = 1.0 / jnp.sqrt(running_var + eps)
    scale = gamma * inv_std
    shift = (b - running_mean) * scale + beta

    vmem_limit = _vmem_limit_bytes()
    budget = int(0.85 * vmem_limit)
    tn, tk = _pick_nk_tiles(inplanes, planes, compute_dtype, budget)
    if tile_n is not None:
        tn = tile_n
    if tile_k is not None:
        tk = tile_k

    K_pad = _round_up(inplanes, tk)
    N_pad = _round_up(planes, tn)

    # Zero padding is exact: padded K contributes 0 to the dot product, padded
    # N columns get scale=shift=0 -> relu(0)=0 and are sliced off.
    w_t = w.T
    if (K_pad, N_pad) != (inplanes, planes):
        w_t = jnp.pad(w_t, ((0, K_pad - inplanes), (0, N_pad - planes)))
    w_p = w_t.astype(compute_dtype)

    scale_p = scale.astype(jnp.float32)
    shift_p = shift.astype(jnp.float32)
    if N_pad != planes:
        scale_p = jnp.pad(scale_p, (0, N_pad - planes))
        shift_p = jnp.pad(shift_p, (0, N_pad - planes))
    ss = jnp.stack([scale_p, shift_p], axis=0)

    return FcBlockParams(w_p=w_p, ss=ss, K=inplanes, N=planes, tn=tn, tk=tk,
                         compute_dtype=compute_dtype, vmem_limit=vmem_limit)


def _fc_block_kernel_single_k(x_ref, w_ref, ss_ref, o_ref):
    """No K grid axis: one matmul + fused affine/ReLU epilogue, no accumulator."""
    y = jnp.dot(x_ref[...], w_ref[...], preferred_element_type=jnp.float32)
    scale = ss_ref[0:1, :]
    shift = ss_ref[1:2, :]
    o_ref[...] = jnp.maximum(y * scale + shift, 0.0).astype(o_ref.dtype)


def _fc_block_kernel_multi_k(x_ref, w_ref, ss_ref, o_ref, acc_ref):
    """grid = (M//tm, N//tn, K//tk); K (reduction) is the last ('arbitrary') axis."""
    @pl.when(pl.program_id(2) == 0)
    def _():
        acc_ref[...] = jnp.zeros_like(acc_ref)

    acc_ref[...] += jnp.dot(
        x_ref[...], w_ref[...], preferred_element_type=jnp.float32
    )

    @pl.when(pl.program_id(2) == pl.num_programs(2) - 1)
    def _():
        scale = ss_ref[0:1, :]
        shift = ss_ref[1:2, :]
        y = acc_ref[...] * scale + shift
        o_ref[...] = jnp.maximum(y, 0.0).astype(o_ref.dtype)


@functools.partial(
    jax.jit,
    static_argnames=("N", "tm", "tn", "tk", "compute_dtype", "vmem_limit"),
)
def _fc_block_call(x, w_p, ss, *, N, tm, tn, tk, compute_dtype, vmem_limit):
    M, K = x.shape
    K_pad, N_pad = w_p.shape
    out_dtype = x.dtype

    M_pad = _round_up(M, tm)

    # Only cast / pad x when actually required (no gratuitous HBM round trips).
    x_p = x
    if x_p.dtype != compute_dtype:
        x_p = x_p.astype(compute_dtype)
    if (M_pad, K_pad) != (M, K):
        x_p = jnp.pad(x_p, ((0, M_pad - M), (0, K_pad - K)))

    Mg, Ng, Kg = M_pad // tm, N_pad // tn, K_pad // tk

    c_itemsize = jnp.dtype(compute_dtype).itemsize
    o_itemsize = jnp.dtype(out_dtype).itemsize
    cost = pl.CostEstimate(
        flops=2 * M_pad * N_pad * K_pad,
        transcendentals=0,
        bytes_accessed=(
            M_pad * K_pad * c_itemsize
            + K_pad * N_pad * c_itemsize
            + 2 * N_pad * 4
            + M_pad * N_pad * o_itemsize
        ),
    )
    cparams_kwargs = dict(vmem_limit_bytes=vmem_limit)

    if Kg == 1:
        out = pl.pallas_call(
            _fc_block_kernel_single_k,
            out_shape=jax.ShapeDtypeStruct((M_pad, N_pad), out_dtype),
            grid_spec=pltpu.PrefetchScalarGridSpec(
                num_scalar_prefetch=0,
                grid=(Mg, Ng),
                in_specs=[
                    pl.BlockSpec((tm, K_pad), lambda i, j: (i, 0)),   # x panel
                    pl.BlockSpec((K_pad, tn), lambda i, j: (0, j)),   # w panel
                    pl.BlockSpec((2, tn), lambda i, j: (0, j)),       # scale/shift
                ],
                out_specs=pl.BlockSpec((tm, tn), lambda i, j: (i, j)),
            ),
            compiler_params=pltpu.CompilerParams(
                dimension_semantics=("parallel", "parallel"), **cparams_kwargs
            ),
            cost_estimate=cost,
        )(x_p, w_p, ss)
    else:
        # TODO(synk): if xprof shows exposed DMA at K boundaries, add
        #             pipeline_mode=pl.Buffered(3) on the w BlockSpec.
        out = pl.pallas_call(
            _fc_block_kernel_multi_k,
            out_shape=jax.ShapeDtypeStruct((M_pad, N_pad), out_dtype),
            grid_spec=pltpu.PrefetchScalarGridSpec(
                num_scalar_prefetch=0,
                grid=(Mg, Ng, Kg),
                in_specs=[
                    pl.BlockSpec((tm, tk), lambda i, j, k: (i, k)),   # x tile
                    pl.BlockSpec((tk, tn), lambda i, j, k: (k, j)),   # w tile
                    pl.BlockSpec((2, tn), lambda i, j, k: (0, j)),    # scale/shift
                ],
                out_specs=pl.BlockSpec((tm, tn), lambda i, j, k: (i, j)),
                scratch_shapes=[pltpu.VMEM((tm, tn), jnp.float32)],
            ),
            compiler_params=pltpu.CompilerParams(
                dimension_semantics=("parallel", "parallel", "arbitrary"),
                **cparams_kwargs,
            ),
            cost_estimate=cost,
        )(x_p, w_p, ss)

    if (M_pad, N_pad) != (M, N):
        out = out[:M, :N]
    return out


def fc_block_forward(x, params: FcBlockParams):
    """x: (B, inplanes). Output: (B, planes) in x.dtype (eval-mode fc_block)."""
    M, K = x.shape
    assert K == params.K, f"expected K={params.K}, got {K}"
    itemsize = jnp.dtype(params.compute_dtype).itemsize
    # bf16 vregs pack 16 sublanes (32 for 8-bit dtypes) -> align tm accordingly.
    m_align = 32 if itemsize == 1 else (16 if itemsize == 2 else 8)
    tm = min(512, _round_up(M, m_align))
    return _fc_block_call(
        x, params.w_p, params.ss,
        N=params.N, tm=tm, tn=params.tn, tk=params.tk,
        compute_dtype=params.compute_dtype, vmem_limit=params.vmem_limit,
    )


def make_raw_params(key, inplanes, planes):
    """Deterministic synthetic parameters matching nn.Linear + nn.BatchNorm1d."""
    k_w, k_b, k_m, k_v = jax.random.split(key, 4)
    bound = 1.0 / (inplanes ** 0.5)
    w = jax.random.uniform(k_w, (planes, inplanes), jnp.float32, -bound, bound)
    b = jax.random.uniform(k_b, (planes,), jnp.float32, -bound, bound)
    gamma = jnp.ones((planes,), jnp.float32)
    beta = jnp.zeros((planes,), jnp.float32)
    running_mean = 0.1 * jax.random.normal(k_m, (planes,), jnp.float32)
    running_var = jnp.abs(jax.random.normal(k_v, (planes,), jnp.float32)) + 0.5
    eps = 1e-5
    return w, b, gamma, beta, running_mean, running_var, eps


def reference_forward(x, raw):
    w, b, gamma, beta, rm, rv, eps = raw
    y = x @ w.T + b
    y = (y - rm) / jnp.sqrt(rv + eps) * gamma + beta
    # dropout: identity in eval mode
    return jnp.maximum(y, 0.0)


if __name__ == "__main__":
    key = jax.random.PRNGKey(0)
    kx1, kp1, kx2, kp2 = jax.random.split(key, 4)

    # --- Test 1: demo shape -> single-K fast path, zero padding, no slices. ---
    B, inplanes, planes = 16, 256, 128
    x1 = jax.random.normal(kx1, (B, inplanes), jnp.float32)
    raw1 = make_raw_params(kp1, inplanes, planes)
    ref1 = reference_forward(x1, raw1)

    params1_f32 = prepare_fc_block(*raw1[:6], raw1[6], compute_dtype=jnp.float32)
    out1_f32 = jax.block_until_ready(fc_block_forward(x1, params1_f32))
    assert out1_f32.shape == (B, planes) and out1_f32.dtype == jnp.float32
    assert jnp.allclose(out1_f32, ref1, atol=1e-3, rtol=1e-3), "f32 mismatch"

    params1_bf16 = prepare_fc_block(*raw1[:6], raw1[6])  # default bf16 compute
    out1_bf16 = jax.block_until_ready(fc_block_forward(x1, params1_bf16))
    assert out1_bf16.dtype == jnp.float32  # output follows x.dtype
    assert jnp.allclose(out1_bf16, ref1, atol=3e-2, rtol=3e-2), "bf16 mismatch"

    # bf16 activations in -> bf16 output written directly by the kernel.
    x1_bf16 = x1.astype(jnp.bfloat16)
    out1_act_bf16 = jax.block_until_ready(fc_block_forward(x1_bf16, params1_bf16))
    assert out1_act_bf16.dtype == jnp.bfloat16
    assert jnp.allclose(out1_act_bf16.astype(jnp.float32), ref1,
                        atol=1e-1, rtol=5e-2), "bf16-activation mismatch"

    # --- Test 2: multi-K accumulator path + M/N padding (forced small tiles). ---
    B2, inplanes2, planes2 = 30, 512, 192
    x2 = jax.random.normal(kx2, (B2, inplanes2), jnp.float32)
    raw2 = make_raw_params(kp2, inplanes2, planes2)
    ref2 = reference_forward(x2, raw2)

    params2 = prepare_fc_block(*raw2[:6], raw2[6], compute_dtype=jnp.float32,
                               tile_n=128, tile_k=128)
    out2 = jax.block_until_ready(fc_block_forward(x2, params2))
    assert out2.shape == (B2, planes2)
    assert jnp.allclose(out2, ref2, atol=1e-3, rtol=1e-3), "multi-K mismatch"

    print("KERNEL_OK")
</pallas_src>

<mosaic_0001>
module attributes {stable_mosaic.version = 11 : i64} {
  func.func @_fc_block_kernel_single_k(%arg0: i32, %arg1: i32, %arg2: memref<16x256xf32, #tpu.memory_space<vmem>>, %arg3: memref<256x128xf32, #tpu.memory_space<vmem>>, %arg4: memref<2x128xf32, #tpu.memory_space<vmem>>, %arg5: memref<16x128xf32, #tpu.memory_space<vmem>>) attributes {dimension_semantics = [#tpu.dimension_semantics<parallel>, #tpu.dimension_semantics<parallel>], iteration_bounds = array<i64: 1, 1>, scalar_prefetch = 0 : i64, scratch_operands = 0 : i64, tpu.core_type = #tpu.core_type<tc>, window_params = [{transform_indices = @transform_0, window_bounds = array<i64: 16, 256>}, {transform_indices = @transform_1, window_bounds = array<i64: 256, 128>}, {transform_indices = @transform_2, window_bounds = array<i64: 2, 128>}, {transform_indices = @transform_3, window_bounds = array<i64: 16, 128>}]} {
    %c0 = arith.constant 0 : index
    %c0_0 = arith.constant 0 : index
    %0 = vector.load %arg2[%c0, %c0_0] : memref<16x256xf32, #tpu.memory_space<vmem>>, vector<16x256xf32>
    %c0_1 = arith.constant 0 : index
    %c0_2 = arith.constant 0 : index
    %1 = vector.load %arg3[%c0_1, %c0_2] : memref<256x128xf32, #tpu.memory_space<vmem>>, vector<256x128xf32>
    %cst = arith.constant dense<0.000000e+00> : vector<16x128xf32>
    %2 = tpu.matmul %0, %1, %cst {dimension_numbers = #tpu.dot_dimension_numbers<[1], [0], [0], [1], [0, 0, 1, 1], [], []>} : vector<16x256xf32>, vector<256x128xf32>, vector<16x128xf32> -> vector<16x128xf32>
    %c0_3 = arith.constant 0 : index
    %c0_4 = arith.constant 0 : index
    %3 = vector.load %arg4[%c0_3, %c0_4] : memref<2x128xf32, #tpu.memory_space<vmem>>, vector<1x128xf32>
    %c1 = arith.constant 1 : index
    %c0_5 = arith.constant 0 : index
    %4 = vector.load %arg4[%c1, %c0_5] : memref<2x128xf32, #tpu.memory_space<vmem>>, vector<1x128xf32>
    %5 = vector.broadcast %3 : vector<1x128xf32> to vector<16x128xf32>
    %6 = arith.mulf %2, %5 : vector<16x128xf32>
    %7 = vector.broadcast %4 : vector<1x128xf32> to vector<16x128xf32>
    %8 = arith.addf %6, %7 : vector<16x128xf32>
    %cst_6 = arith.constant 0.000000e+00 : f32
    %9 = vector.broadcast %cst_6 : f32 to vector<16x128xf32>
    %10 = arith.maximumf %8, %9 : vector<16x128xf32>
    %c0_7 = arith.constant 0 : index
    %c0_8 = arith.constant 0 : index
    %11 = vector.load %arg5[%c0_7, %c0_8] : memref<16x128xf32, #tpu.memory_space<vmem>>, vector<16x128xf32>
    tpu.vector_store %arg5[%c0_7, %c0_8], %10 {strides = array<i32>} : memref<16x128xf32, #tpu.memory_space<vmem>>, vector<16x128xf32>,
    return
  }
  func.func @transform_0(%arg0: i32, %arg1: i32) -> (i32, i32) {
    %c0_i32 = arith.constant 0 : i32
    %c0_i32_0 = arith.constant 0 : i32
    return %arg0, %c0_i32 : i32, i32
  }
  func.func @transform_1(%arg0: i32, %arg1: i32) -> (i32, i32) {
    %c0_i32 = arith.constant 0 : i32
    %c0_i32_0 = arith.constant 0 : i32
    return %c0_i32, %arg1 : i32, i32
  }
  func.func @transform_2(%arg0: i32, %arg1: i32) -> (i32, i32) {
    %c0_i32 = arith.constant 0 : i32
    %c0_i32_0 = arith.constant 0 : i32
    return %c0_i32, %arg1 : i32, i32
  }
  func.func @transform_3(%arg0: i32, %arg1: i32) -> (i32, i32) {
    %c0_i32 = arith.constant 0 : i32
    return %arg0, %arg1 : i32, i32
  }
}

</mosaic_0001>

<bundles_post_ra>
// kernel: _fc_block_call.1
= control target key start
LH: loop header
LB: loop body
LE: loop exit
PB: predicated region body
PF: predicated region fallthrough
CT: control target
= control target key end

     0   :  { %8 = vsyncpa [#allocation3], 0  ;;  %s432_s0 = inlined_call_operand.hbm [shape: f32[16,256], index: 0, kind: input, shape index: {}]   ;;  %s433_s1 = inlined_call_operand.hbm [shape: f32[256,128], index: 1, kind: input, shape index: {}]   ;;  %s434_s2 = inlined_call_operand.vmem [shape: f32[2,128], index: 2, kind: input, shape index: {}]   ;;  %s435_s3 = inlined_call_operand.hbm [shape: f32[16,128], index: 3, kind: output, shape index: {}]  }
   0x1   :  { %9 = vsyncpa [#allocation6], 0 }
   0x2   :  { %10 = vsyncpa [#allocation4], 0  ;;  %s357_s12 = smov [#allocation2]   ;;  %s285_s16 = scalar_lea.hbm %s432_s0, 512 }
   0x3   :  { %s16_s13 = sshll.u32 %s357_s12, 4  ;;  %p286_p0 = scmp.ne.s32.totalorder %s432_s0, %s285_s16  ;;  %s17_s13 = int_to_ptr.vmem [resolvable:$true] %s16_s13 }
   0x4   :  { %p289_p1 = scmp.lt.u32.totalorder %s285_s16, %s432_s0 }
   0x6   :  { %p291_p2 = pnand %p289_p1, %p286_p0 }
   0x8   :  { %294 = shalt.err (!%p291_p2)
}
   0x9   :  { %s295_s21 = scalar_lea.vmem %s17_s13, 512  ;;  %p300_p4 = scmp.lt.s32.totalorder %s17_s13, %s17_s13 }
   0xa   :  { %p296_p3 = scmp.ne.s32.totalorder %s17_s13, %s295_s21  ;;  %p301_p5 = scmp.lt.s32.totalorder %s295_s21, %s295_s21 }
   0xc   :  { %p302_p6 = por %p301_p5, %p300_p4 }
   0xe   :  { %p303_p7 = pnand %p302_p6, %p296_p3 }
  0x10   :  { %306 = shalt.err (!%p303_p7)
}
  0x11   :  { %s358_s22 = smov 256   ;;  %s359_s23 = smov 16  }
  0x12   :  { %22 = dma.hbm_to_vmem [thread:$0]  %s432_s0, 512, %s17_s13, [#allocation3], %s358_s22, %s358_s22, %s359_s23  }
  0x13   :  { %s360_s26 = smov [#allocation5]   ;;  %s307_s30 = scalar_lea.hbm %s433_s1, 4096 }
  0x14   :  { %s28_s27 = sshll.u32 %s360_s26, 4  ;;  %p308_p8 = scmp.ne.s32.totalorder %s433_s1, %s307_s30  ;;  %s29_s27 = int_to_ptr.vmem [resolvable:$true] %s28_s27 }
  0x15   :  { %p311_p9 = scmp.lt.u32.totalorder %s307_s30, %s433_s1 }
  0x17   :  { %p313_p10 = pnand %p311_p9, %p308_p8 }
  0x19   :  { %316 = shalt.err (!%p313_p10)
}
  0x1a   :  { %s317_s8 = scalar_lea.vmem %s29_s27, 4096  ;;  %p322_p12 = scmp.lt.s32.totalorder %s29_s27, %s29_s27 }
  0x1b   :  { %p318_p11 = scmp.ne.s32.totalorder %s29_s27, %s317_s8  ;;  %p323_p13 = scmp.lt.s32.totalorder %s317_s8, %s317_s8 }
  0x1d   :  { %p324_p0 = por %p323_p13, %p322_p12 }
  0x1f   :  { %p325_p1 = pnand %p324_p0, %p318_p11 }
  0x21   :  { %328 = shalt.err (!%p325_p1)
}
  0x22   :  { %s361_s0 = smov 128   ;;  %s362_s9 = smov 8  }
  0x23   :  { %34 = dma.hbm_to_vmem [thread:$0]  %s433_s1, 4096, %s29_s27, [#allocation6], %s361_s0, %s361_s0, %s362_s9  }
  0x24   :  { %351 = dma.done.wait [#allocation3], 512  }
  0x25   :  { %352 = vsyncadd [#allocation3], 4294966784 }
  0x26   :  { %353 = dma.done.wait [#allocation6], 4096  }
  0x27   :  { %354 = vsyncadd [#allocation6], 4294963200  ;;  %v63_v0 = vld [vmem:[#allocation5 + $0x80] sm:$0xff]  ;;  %v64_v1 = vld [vmem:[#allocation5 + $0x88] sm:$0xff]  ;;  %s363_s15 = smov [#allocation7]  }
  0x28   :  { %v47_v2 = vld [vmem:[#allocation5] sm:$0xff]  ;;  %v230_v3 = vpack.c.bf16 %v64_v1, %v63_v0  ;;  %v48_v4 = vld [vmem:[#allocation5 + $0x8] sm:$0xff]  ;;  %v65_v5 = vld [vmem:[#allocation5 + $0x90] sm:$0xff]  ;;  %s177_s16 = sshll.u32 %s363_s15, 4  ;;  %s178_s16 = int_to_ptr.vmem [resolvable:$true] %s177_s16 }
  0x29   :  { %v66_v6 = vld [vmem:[#allocation5 + $0x98] sm:$0xff]  ;;  %v232_v7 = vpack.c.bf16 %v48_v4, %v47_v2  ;;  %v49_v9 = vld [vmem:[#allocation5 + $0x10] sm:$0xff]  ;;  %v67_v11 = vld [vmem:[#allocation5 + $0xa0] sm:$0xff]  ;;  %s329_s17 = scalar_lea.vmem %s178_s16, 256  ;;  %p334_p3 = scmp.lt.s32.totalorder %s178_s16, %s178_s16 }
  0x2a   :  { %v234_v8 = vpack.c.bf16 %v66_v6, %v65_v5  ;;  %v50_v10 = vld [vmem:[#allocation5 + $0x18] sm:$0xff]  ;;  %231 = vmatprep.subr.bf16.mxu0 %v230_v3  ;;  %262 = vmatprep.subr.bf16.mxu1 %v230_v3  ;;  %v68_v12 = vld [vmem:[#allocation5 + $0xa8] sm:$0xff]  ;;  %v51_v15 = vld [vmem:[#allocation5 + $0x20] sm:$0xff]  ;;  %p330_p2 = scmp.ne.s32.totalorder %s178_s16, %s329_s17  ;;  %p335_p4 = scmp.lt.s32.totalorder %s329_s17, %s329_s17 }
  0x2b   :  { %233 = vmatpush3.bf16.msra.mxu0 %v232_v7  ;;  %270 = vmatpush3.bf16.msra.mxu1 %v232_v7  ;;  %v236_v13 = vpack.c.bf16 %v50_v10, %v49_v9  ;;  %v238_v14 = vpack.c.bf16 %v68_v12, %v67_v11  ;;  %v52_v16 = vld [vmem:[#allocation5 + $0x28] sm:$0xff]  ;;  %v69_v17 = vld [vmem:[#allocation5 + $0xb0] sm:$0xff]  ;;  %v70_v18 = vld [vmem:[#allocation5 + $0xb8] sm:$0xff] }
  0x2c   :  { %235 = vmatprep.subr.bf16.mxu0 %v234_v8  ;;  %263 = vmatprep.subr.bf16.mxu1 %v234_v8  ;;  %v240_v19 = vpack.c.bf16 %v52_v16, %v51_v15  ;;  %v242_v20 = vpack.c.bf16 %v70_v18, %v69_v17  ;;  %v53_v21 = vld [vmem:[#allocation5 + $0x30] sm:$0xff]  ;;  %v54_v22 = vld [vmem:[#allocation5 + $0x38] sm:$0xff]  ;;  %v71_v23 = vld [vmem:[#allocation5 + $0xc0] sm:$0xff]  ;;  %p336_p5 = por %p335_p4, %p334_p3 }
  0x2d   :  { %v72_v24 = vld [vmem:[#allocation5 + $0xc8] sm:$0xff]  ;;  %v46_v26 = vld [vmem:[#allocation2 + $0x18] sm:$0xff]  ;;  %v244_v27 = vpack.c.bf16 %v54_v22, %v53_v21  ;;  %v55_v29 = vld [vmem:[#allocation5 + $0x40] sm:$0xff] }
  0x2e   :  { %v44_v25 = vld [vmem:[#allocation2 + $0x8] sm:$0xff]  ;;  %v246_v28 = vpack.c.bf16 %v72_v24, %v71_v23  ;;  %v73_v31 = vld [vmem:[#allocation5 + $0xd0] sm:$0xff]  ;;  %v74_v32 = vld [vmem:[#allocation5 + $0xd8] sm:$0xff]  ;;  %148 = vmatprep.mubr.f32.mxu1 %v46_v26  ;;  %p337_p6 = pnand %p336_p5, %p330_p2 }
  0x2f   :  { %237 = vmatpush3.bf16.msra.mxu0 %v236_v13  ;;  %271 = vmatpush3.bf16.msra.mxu1 %v236_v13  ;;  %v56_v30 = vld [vmem:[#allocation5 + $0x48] sm:$0xff]  ;;  %v250_v34 = vpack.c.bf16 %v74_v32, %v73_v31  ;;  %v57_v35 = vld [vmem:[#allocation5 + $0x50] sm:$0xff]  ;;  %v58_v36 = vld [vmem:[#allocation5 + $0x58] sm:$0xff] }
  0x30   :  { %239 = vmatprep.subr.bf16.mxu0 %v238_v14  ;;  %264 = vmatprep.subr.bf16.mxu1 %v238_v14  ;;  %v248_v33 = vpack.c.bf16 %v56_v30, %v55_v29  ;;  %v75_v37 = vld [vmem:[#allocation5 + $0xe0] sm:$0xff]  ;;  %v76_v38 = vld [vmem:[#allocation5 + $0xe8] sm:$0xff]  ;;  %v252_v39 = vpack.c.bf16 %v58_v36, %v57_v35  ;;  %v77_v43 = vld [vmem:[#allocation5 + $0xf0] sm:$0xff] }
  0x31   :  { %143 = vmatprep.mubr.f32.mxu0 %v44_v25  ;;  %v254_v40 = vpack.c.bf16 %v76_v38, %v75_v37  ;;  %v59_v41 = vld [vmem:[#allocation5 + $0x60] sm:$0xff]  ;;  %v60_v42 = vld [vmem:[#allocation5 + $0x68] sm:$0xff]  ;;  %v78_v44 = vld [vmem:[#allocation5 + $0xf8] sm:$0xff] }
  0x32   :  { %v256_v45 = vpack.c.bf16 %v60_v42, %v59_v41  ;;  %v258_v46 = vpack.c.bf16 %v78_v44, %v77_v43  ;;  %v61_v47 = vld [vmem:[#allocation5 + $0x70] sm:$0xff]  ;;  %v62_v48 = vld [vmem:[#allocation5 + $0x78] sm:$0xff]  ;;  %v43_v50 = vld [vmem:[#allocation2] sm:$0xff] }
  0x33   :  { %241 = vmatpush3.bf16.msra.mxu0 %v240_v19  ;;  %272 = vmatpush3.bf16.msra.mxu1 %v240_v19  ;;  %v260_v49 = vpack.c.bf16 %v62_v48, %v61_v47  ;;  %v45_v51 = vld [vmem:[#allocation2 + $0x10] sm:$0xff]  ;;  %v190_v55 = vld [vmem:[%s434_s2] ss:$0 sm:$0xff]  ;;  %v191_v59 = vld [vmem:[%s434_s2 + $0x1] ss:$0 sm:$0xff] }
  0x34   :  { %243 = vmatprep.subr.bf16.mxu0 %v242_v20  ;;  %265 = vmatprep.subr.bf16.mxu1 %v242_v20 }
  0x37   :  { %245 = vmatpush3.bf16.msra.mxu0 %v244_v27  ;;  %273 = vmatpush3.bf16.msra.mxu1 %v244_v27 }
  0x38   :  { %247 = vmatprep.subr.bf16.mxu0 %v246_v28  ;;  %266 = vmatprep.subr.bf16.mxu1 %v246_v28 }
  0x3b   :  { %249 = vmatpush3.bf16.msra.mxu0 %v248_v33  ;;  %274 = vmatpush3.bf16.msra.mxu1 %v248_v33 }
  0x3c   :  { %251 = vmatprep.subr.bf16.mxu0 %v250_v34  ;;  %267 = vmatprep.subr.bf16.mxu1 %v250_v34 }
  0x3f   :  { %253 = vmatpush3.bf16.msra.mxu0 %v252_v39  ;;  %275 = vmatpush3.bf16.msra.mxu1 %v252_v39 }
  0x40   :  { %255 = vmatprep.subr.bf16.mxu0 %v254_v40  ;;  %268 = vmatprep.subr.bf16.mxu1 %v254_v40 }
  0x43   :  { %257 = vmatpush3.bf16.msra.mxu0 %v256_v45  ;;  %276 = vmatpush3.bf16.msra.mxu1 %v256_v45 }
  0x44   :  { %259 = vmatprep.subr.bf16.mxu0 %v258_v46  ;;  %269 = vmatprep.subr.bf16.mxu1 %v258_v46 }
  0x47   :  { %261 = vmatpush3.bf16.msra.mxu0 %v260_v49  ;;  %277 = vmatpush3.bf16.msra.mxu1 %v260_v49 }
  0x4a   :  { %144 = vmatmul.mubr.f32.vlgmr.msra.gmra.mrb[0].mxu0 %v43_v50  ;;  %149 = vmatmul.mubr.f32.vlgmr.msra.gmra.mrb[0].mxu1 %v45_v51 }
 0x11d   :  { %v224_v52 = vpop.f32.mrb[0].mxu0  ;;  %v227_v53 = vpop.f32.mrb[0].mxu1 }
 0x11e   :  { %v225_v54 = vpop.f32.mrb[1].mxu0  ;;  %v228_v56 = vpop.f32.mrb[1].mxu1 }
 0x11f   :  { %v226_v57 = vadd.f32 %v225_v54, %v224_v52  ;;  %v229_v58 = vadd.f32 %v228_v56, %v227_v53 }
 0x121   :  { %v160_v60 = vmul.f32 %v226_v57, %v190_v55  ;;  %v161_v61 = vmul.f32 %v229_v58, %v190_v55 }
 0x123   :  { %v166_v62 = vadd.f32 %v191_v59, %v160_v60  ;;  %v167_v63 = vadd.f32 %v191_v59, %v161_v61 }
 0x125   :  { %v168_v0 = vmax.f32 %v166_v62, 0.0  ;;  %v169_v1 = vmax.f32 %v167_v63, 0.0 }
 0x127   :  { %170 = vst [vmem:[#allocation7] sm:$0xff] %v168_v0  ;;  %171 = vst [vmem:[#allocation7 + $0x8] sm:$0xff] %v169_v1 }
 0x128   :  { %340 = shalt.err (!%p337_p6)
}
 0x129   :  { %s341_s19 = scalar_lea.hbm %s435_s3, 256 }
 0x12a   :  { %p342_p7 = scmp.ne.s32.totalorder %s435_s3, %s341_s19  ;;  %p345_p8 = scmp.lt.u32.totalorder %s341_s19, %s435_s3 }
 0x12c   :  { %p347_p9 = pnand %p345_p8, %p342_p7 }
 0x12e   :  { %350 = shalt.err (!%p347_p9)
}
 0x12f   :  { %183 = dma.vmem_to_hbm [thread:$0]  %s178_s16, 256, %s435_s3, [#allocation4], %s361_s0, %s361_s0, %s362_s9  }
 0x130   :  { %355 = dma.done.wait [#allocation4], 256  }
 0x131   :  { %356 = vsyncadd [#allocation4], 4294967040 }
 0x132   :  { %187 = vsyncpa [#allocation3], 1 }
 0x133   :  { %188 = vsyncpa [#allocation6], 1 }
 0x134   :  { %189 = vsyncpa [#allocation4], 1 }

</bundles_post_ra>
